<compile_context>
chip_gen: v7x
topology: tpu7x:2x2x1
jax: 0.10.0
libtpu: 0.0.40
codegen_flags: <defaults>
</compile_context>

<pallas_src>
import math

import jax
import jax.numpy as jnp
from jax.experimental import pallas as pl
from jax.experimental.pallas import tpu as pltpu


def _data_embedding_kernel(xk_ref, w_ref, freq_ref, phase_ref, o_ref):
    # xk_ref:    (TL, 3*c_in)     taps [x[t-1], x[t], x[t+1]] concatenated on lanes
    # w_ref:     (3*c_in, d_model) fused conv weight, rows ordered (tap, channel)
    # freq_ref:  (1, d_model)     per-column sinusoid frequency
    # phase_ref: (1, d_model)     0 for even cols, pi/2 for odd cols
    # o_ref:     (TL, d_model)
    y = jnp.dot(xk_ref[...], w_ref[...], preferred_element_type=jnp.float32)

    tl, d_model = o_ref.shape
    l_start = pl.program_id(1) * tl
    pos = (l_start
           + jax.lax.broadcasted_iota(jnp.int32, (tl, d_model), 0)
           ).astype(jnp.float32)
    pe = jnp.sin(pos * freq_ref[...] + phase_ref[...])   # EUP, free slot here

    o_ref[...] = (y + pe).astype(o_ref.dtype)


def _choose_tile_l(L, cap=512):
    """Largest multiple-of-8 divisor of L up to `cap`; falls back to full L."""
    if L % 8 != 0 or L <= cap:
        return L
    tl = cap - (cap % 8)
    while L % tl != 0:
        tl -= 8
    return tl


def data_embedding(x, conv_weight, *, tile_l=None):
    """x: (B, L, c_in); conv_weight: (d_model, c_in, 3) (PyTorch Conv1d layout).
    Returns (B, L, d_model) = circular Conv1d(k=3, no bias) + sinusoidal PE."""
    B, L, c_in = x.shape
    d_model = conv_weight.shape[0]
    assert conv_weight.shape == (d_model, c_in, 3)
    assert d_model % 2 == 0, "sinusoidal PE (like the PyTorch module) needs even d_model"

    if tile_l is None:
        tile_l = _choose_tile_l(L)
    assert L % tile_l == 0, "tile_l must divide L"
    num_l = L // tile_l

    # Circular shifts precomputed in the wrapper so every L-tile is independent,
    # then the three conv taps fuse into one matmul with K = 3*c_in.
    x_prev = jnp.roll(x, 1, axis=1)
    x_next = jnp.roll(x, -1, axis=1)
    xk = jnp.concatenate([x_prev, x, x_next], axis=-1)          # (B, L, 3*c_in)

    # (d_model, c_in, 3) -> (3, c_in, d_model) -> (3*c_in, d_model); row order
    # (tap, channel) matches the concatenation order above.
    w2d = jnp.transpose(conv_weight, (2, 1, 0)).reshape(3 * c_in, d_model)
    w2d = w2d.astype(x.dtype)

    # PE basis: pe[t, j] = sin(t * freq[j] + phase[j]); phase pi/2 turns sin
    # into cos for the odd columns.  Tiny (1, d_model) constants, fetched once.
    half = jnp.exp(jnp.arange(0, d_model, 2, dtype=jnp.float32)
                   * (-math.log(10000.0) / d_model))             # (d_model//2,)
    freq = jnp.repeat(half, 2)[None, :]                          # (1, d_model)
    phase = jnp.tile(jnp.array([0.0, math.pi / 2.0], jnp.float32),
                     d_model // 2)[None, :]                      # (1, d_model)

    return pl.pallas_call(
        _data_embedding_kernel,
        out_shape=jax.ShapeDtypeStruct((B, L, d_model), x.dtype),
        grid_spec=pltpu.PrefetchScalarGridSpec(
            num_scalar_prefetch=0,
            grid=(B, num_l),
            in_specs=[
                pl.BlockSpec((pl.Squeezed(), tile_l, 3 * c_in),
                             lambda b, l: (b, l, 0)),
                pl.BlockSpec((3 * c_in, d_model), lambda b, l: (0, 0)),
                pl.BlockSpec((1, d_model), lambda b, l: (0, 0)),
                pl.BlockSpec((1, d_model), lambda b, l: (0, 0)),
            ],
            out_specs=pl.BlockSpec((pl.Squeezed(), tile_l, d_model),
                                   lambda b, l: (b, l, 0)),
        ),
        compiler_params=pltpu.CompilerParams(
            dimension_semantics=("parallel", "parallel")),
    )(xk, w2d, freq, phase)


def init_conv_weight(key, c_in, d_model, kernel_size=3):
    """Kaiming normal, mode='fan_in', nonlinearity='leaky_relu' (slope 0.01)."""
    fan_in = c_in * kernel_size
    gain = math.sqrt(2.0 / (1.0 + 0.01 ** 2))
    std = gain / math.sqrt(fan_in)
    return std * jax.random.normal(key, (d_model, c_in, kernel_size),
                                   dtype=jnp.float32)


def _reference(x, conv_weight):
    """Pure-JAX reference: circular Conv1d(k=3, pad=1, no bias) + sinusoidal PE."""
    B, L, c_in = x.shape
    d_model = conv_weight.shape[0]
    w = jnp.transpose(conv_weight, (2, 1, 0))                    # (3, c_in, d_model)
    x_prev = jnp.roll(x, 1, axis=1)
    x_next = jnp.roll(x, -1, axis=1)
    y = (jnp.einsum('blc,cd->bld', x_prev, w[0])
         + jnp.einsum('blc,cd->bld', x, w[1])
         + jnp.einsum('blc,cd->bld', x_next, w[2]))
    pos = jnp.arange(L, dtype=jnp.float32)[:, None]
    div = jnp.exp(jnp.arange(0, d_model, 2, dtype=jnp.float32)
                  * (-math.log(10000.0) / d_model))
    pe = jnp.zeros((L, d_model), jnp.float32)
    pe = pe.at[:, 0::2].set(jnp.sin(pos * div))
    pe = pe.at[:, 1::2].set(jnp.cos(pos * div))
    return y + pe[None]


if __name__ == "__main__":
    # Small but lane/sublane-friendly demo shapes: d_model multiple of 128
    # (lane-dense stores), L multiple of 8 and tiled so the PE position offset
    # across L-tiles is exercised.
    B, L, c_in, d_model = 2, 16, 4, 128

    key = jax.random.PRNGKey(0)
    kx, kw = jax.random.split(key)
    x = jax.random.normal(kx, (B, L, c_in), dtype=jnp.float32)
    conv_weight = init_conv_weight(kw, c_in, d_model)            # (d_model, c_in, 3)

    out = data_embedding(x, conv_weight, tile_l=8)               # grid = (2, 2)
    jax.block_until_ready(out)

    assert out.shape == (B, L, d_model)
    ref = _reference(x, conv_weight)
    assert jnp.allclose(out, ref, atol=1e-3, rtol=1e-3), "mismatch vs reference"
    print("KERNEL_OK")
</pallas_src>

<mosaic_0001>
module attributes {stable_mosaic.version = 11 : i64} {
  func.func @_data_embedding_kernel(%arg0: i32, %arg1: i32, %arg2: memref<1x8x12xf32, #tpu.memory_space<vmem>>, %arg3: memref<12x128xf32, #tpu.memory_space<vmem>>, %arg4: memref<1x128xf32, #tpu.memory_space<vmem>>, %arg5: memref<1x128xf32, #tpu.memory_space<vmem>>, %arg6: memref<1x8x128xf32, #tpu.memory_space<vmem>>) attributes {dimension_semantics = [#tpu.dimension_semantics<parallel>, #tpu.dimension_semantics<parallel>], iteration_bounds = array<i64: 2, 2>, scalar_prefetch = 0 : i64, scratch_operands = 0 : i64, tpu.core_type = #tpu.core_type<tc>, window_params = [{transform_indices = @transform_0, window_bounds = array<i64: 1, 8, 12>}, {pipeline_mode = #tpu.pipeline_mode<synchronous>, transform_indices = @transform_1, window_bounds = array<i64: 12, 128>}, {pipeline_mode = #tpu.pipeline_mode<synchronous>, transform_indices = @transform_2, window_bounds = array<i64: 1, 128>}, {pipeline_mode = #tpu.pipeline_mode<synchronous>, transform_indices = @transform_3, window_bounds = array<i64: 1, 128>}, {transform_indices = @transform_4, window_bounds = array<i64: 1, 8, 128>}]} {
    %c0 = arith.constant 0 : index
    %c0_0 = arith.constant 0 : index
    %c0_1 = arith.constant 0 : index
    %0 = vector.load %arg2[%c0, %c0_0, %c0_1] : memref<1x8x12xf32, #tpu.memory_space<vmem>>, vector<1x8x12xf32>
    %1 = vector.shape_cast %0 : vector<1x8x12xf32> to vector<8x12xf32>
    %c0_2 = arith.constant 0 : index
    %c0_3 = arith.constant 0 : index
    %2 = vector.load %arg3[%c0_2, %c0_3] : memref<12x128xf32, #tpu.memory_space<vmem>>, vector<12x128xf32>
    %cst = arith.constant dense<0.000000e+00> : vector<8x128xf32>
    %3 = tpu.matmul %1, %2, %cst {dimension_numbers = #tpu.dot_dimension_numbers<[1], [0], [0], [1], [0, 0, 1, 1], [], []>} : vector<8x12xf32>, vector<12x128xf32>, vector<8x128xf32> -> vector<8x128xf32>
    %c8_i32 = arith.constant 8 : i32
    %4 = arith.muli %arg1, %c8_i32 : i32
    %5 = tpu.iota {dimensions = array<i32: 0>} : vector<8x128xi32>
    %6 = vector.broadcast %4 : i32 to vector<8x128xi32>
    %7 = arith.addi %6, %5 : vector<8x128xi32>
    %8 = arith.sitofp %7 : vector<8x128xi32> to vector<8x128xf32>
    %c0_4 = arith.constant 0 : index
    %c0_5 = arith.constant 0 : index
    %9 = vector.load %arg4[%c0_4, %c0_5] : memref<1x128xf32, #tpu.memory_space<vmem>>, vector<1x128xf32>
    %10 = vector.broadcast %9 : vector<1x128xf32> to vector<8x128xf32>
    %11 = arith.mulf %8, %10 : vector<8x128xf32>
    %c0_6 = arith.constant 0 : index
    %c0_7 = arith.constant 0 : index
    %12 = vector.load %arg5[%c0_6, %c0_7] : memref<1x128xf32, #tpu.memory_space<vmem>>, vector<1x128xf32>
    %13 = vector.broadcast %12 : vector<1x128xf32> to vector<8x128xf32>
    %14 = arith.addf %11, %13 : vector<8x128xf32>
    %15 = math.sin %14 : vector<8x128xf32>
    %16 = arith.addf %3, %15 : vector<8x128xf32>
    %c0_8 = arith.constant 0 : index
    %c0_9 = arith.constant 0 : index
    %c0_10 = arith.constant 0 : index
    %17 = vector.load %arg6[%c0_8, %c0_9, %c0_10] : memref<1x8x128xf32, #tpu.memory_space<vmem>>, vector<1x8x128xf32>
    %18 = vector.shape_cast %17 : vector<1x8x128xf32> to vector<8x128xf32>
    %19 = vector.shape_cast %16 : vector<8x128xf32> to vector<1x8x128xf32>
    tpu.vector_store %arg6[%c0_8, %c0_9, %c0_10], %19 {strides = array<i32>} : memref<1x8x128xf32, #tpu.memory_space<vmem>>, vector<1x8x128xf32>,
    return
  }
  func.func @transform_0(%arg0: i32, %arg1: i32) -> (i32, i32, i32) {
    %c0_i32 = arith.constant 0 : i32
    %c0_i32_0 = arith.constant 0 : i32
    return %arg0, %arg1, %c0_i32 : i32, i32, i32
  }
  func.func @transform_1(%arg0: i32, %arg1: i32) -> (i32, i32) {
    %c0_i32 = arith.constant 0 : i32
    %c0_i32_0 = arith.constant 0 : i32
    %c0_i32_1 = arith.constant 0 : i32
    return %c0_i32, %c0_i32_0 : i32, i32
  }
  func.func @transform_2(%arg0: i32, %arg1: i32) -> (i32, i32) {
    %c0_i32 = arith.constant 0 : i32
    %c0_i32_0 = arith.constant 0 : i32
    %c0_i32_1 = arith.constant 0 : i32
    return %c0_i32, %c0_i32_0 : i32, i32
  }
  func.func @transform_3(%arg0: i32, %arg1: i32) -> (i32, i32) {
    %c0_i32 = arith.constant 0 : i32
    %c0_i32_0 = arith.constant 0 : i32
    %c0_i32_1 = arith.constant 0 : i32
    return %c0_i32, %c0_i32_0 : i32, i32
  }
  func.func @transform_4(%arg0: i32, %arg1: i32) -> (i32, i32, i32) {
    %c0_i32 = arith.constant 0 : i32
    %c0_i32_0 = arith.constant 0 : i32
    return %arg0, %arg1, %c0_i32 : i32, i32, i32
  }
}

</mosaic_0001>

<bundles_post_ra>
// kernel: tpu_custom_call.1
= control target key start
LH: loop header
LB: loop body
LE: loop exit
PB: predicated region body
PF: predicated region fallthrough
CT: control target
= control target key end

     0   :  { %9 = vsyncpa [#allocation3], 0  ;;  %s963_s0 = inlined_call_operand.vmem [shape: f32[2,16,12], index: 0, kind: input, shape index: {}]   ;;  %s964_s1 = inlined_call_operand.vmem [shape: f32[12,128], index: 1, kind: input, shape index: {}]   ;;  %s965_s2 = inlined_call_operand.vmem [shape: f32[1,128], index: 2, kind: input, shape index: {}]   ;;  %s966_s3 = inlined_call_operand.vmem [shape: f32[1,128], index: 3, kind: input, shape index: {}]   ;;  %s967_s4 = inlined_call_operand.hbm [shape: f32[2,16,128], index: 4, kind: output, shape index: {}]  }
   0x1   :  { %11 = vsyncpa [#allocation3 + $0x1], 0  ;;  %s780_s15 = smov 0   ;;  %s782_s16 = smov 0  }
   0x2   :  { %s784_s17 = smov 0   ;;  %s786_s18 = smov 0  }
   0x3   :  { %s788_s19 = smov 0   ;;  %s790_s20 = smov 0  }
   0x4   :  { %s792_s21 = smov 0   ;;  %s794_s22 = smov 0  }
   0x5 LB: > { %s523_s23 = sadd.s32 4294967295, %s742_s22   ;;  %s524_s24 = sadd.s32 4294967294, %s742_s22   ;;  %s742_s22 = sphi %s794_s22, %s17_s22   ;;  %s738_s21 = sphi %s792_s21, %s976_s21   ;;  %s734_s20 = sphi %s790_s20, %s975_s20   ;;  %s730_s19 = sphi %s788_s19, %s974_s19   ;;  %s726_s18 = sphi %s786_s18, %s973_s18   ;;  %s722_s17 = sphi %s784_s17, %s972_s17   ;;  %s718_s16 = sphi %s782_s16, %s971_s16   ;;  %s714_s15 = sphi %s780_s15, %s970_s15  }
   0x6   : > { %s26_s25 = sadd.s32 1, %s734_s20  ;;  %s29_s26 = sadd.s32 1, %s738_s21 }
   0x7   : > { %p27_p0 = scmp.ge.s32.totalorder %s26_s25, 2  ;;  %p139_p1 = scmp.ne.s32.totalorder %s722_s17, %s718_s16 }
   0x8   : > { %p140_p2 = scmp.eq.s32.totalorder %s523_s23, 3  ;;  %p145_p5 = scmp.ne.s32.totalorder %s718_s16, %s714_s15 }
   0x9   : > { %s978_s25 = smov (%p27_p0, %s26_s25), 0  ;;  %s980_s26 = smov (!%p27_p0, %s29_s26), %s738_s21 }
   0xa   : > { %s125_s27 = ssub.s32 %s734_s20, %s978_s25  ;;  %p831_p3 = por %p140_p2, %p139_p1 }
   0xb   : > { %p31_p4 = scmp.ge.s32.totalorder %s980_s26, 2  ;;  %p146_p6 = scmp.eq.s32.totalorder %s524_s24, 3 }
   0xc   : > { %p527_p7 = scmp.ge.s32.totalorder %s742_s22, 1  ;;  %p184_p9 = scmp.lt.s32.totalorder %s742_s22, 5 }
   0xd   : > { %s982_s26 = smov (%p31_p4, %s980_s26), 0  ;;  %p840_p8 = por %p146_p6, %p145_p5 }
   0xe   : > { %s124_s30 = ssub.s32 %s738_s21, %s982_s26  ;;  %s129_s5 = sadd.s32 1, %s722_s17 }
   0xf   : > { %s126_s6 = sor.u32 %s125_s27, %s124_s30  ;;  %p185_p10 = pnand %p527_p7, %p184_p9 }
  0x10   : > { %p127_p11 = scmp.eq.s32.totalorder %s126_s6, 0  ;;  %v222_v0 = vld [vmem:[%s964_s1] sm:$0xff] (!%p185_p10)  ;;  %v223_v1 = vld [vmem:[%s964_s1 + $0x8] sm:$0xf] (!%p185_p10)  ;;  %vm354_vm0 = vcmask (!%p185_p10), 1043456   ;;  %v744_v2 = vmov (!%p185_p10), 0.0|0.0   ;;  %v225_v6 = vlaneseq (!%p185_p10) }
  0x11   : > { %188 = sbr.rel (%p185_p10) target bundleno = 259 (0x103), region = 36  ;;  %555 = vmatprep.subr.bf16.mxu0 (!%p185_p10), %v744_v2  ;;  %v556_v3 = vpack.c.bf16 (!%p185_p10), %v223_v1, %v222_v0  ;;  %vm745_vm1 = vmmov (!%p185_p10), 1   ;;  %p213_p12 = scmp.lt.s32.totalorder (!%p185_p10), %s730_s19, 1  ;;  %vm746_vm3 = vmmov (!%p185_p10), 0   ;;  %v747_v4 = vmov (!%p185_p10), 0.0  }
  0x12   : > { %s849_s7 = scalar_select %p127_p11, %s722_s17, %s129_s5  }
  0x13   : > { %vm557_vm2 = vmpackc.low (!%p185_p10), %vm354_vm0, %vm745_vm1  ;;  %p215_p13 = scmp.lt.s32.totalorder (!%p185_p10), %s726_s18, 1  ;;  %552 = vmatprep.mubr.msk.f32.mxu0 (!%p185_p10), %vm746_vm3, %v747_v4  ;;  %vm350_vm4 = vcmask (!%p185_p10), 97280   ;;  %s531_s6 = sshll.u32 (!%p185_p10), %s726_s18, 3  ;;  %v226_v7 = vshrl.u32 (!%p185_p10), %v225_v6, 7  ;;  %v532_v11 = vld [vmem:[%s965_s2] ss:$0 sm:$0xff] (!%p185_p10) }
  0x14   : > { %558 = vmatpush3.bf16.msk.msra.mxu0 (!%p185_p10), %vm557_vm2, %v556_v3  ;;  %v227_v8 = vstv (!%p185_p10), %s531_s6  ;;  %v533_v13 = vld [vmem:[%s966_s3] ss:$0 sm:$0xff] (!%p185_p10)  ;;  %v748_v22 = vmov (!%p185_p10), 2102212464   ;;  %v749_v24 = vmov (!%p185_p10), 920167782  }
  0x15   : > { %v228_v9 = vadd.s32 (!%p185_p10), %v227_v8, %v226_v7  ;;  %v750_v29 = vmov (!%p185_p10), 1326507024   ;;  %v751_v31 = vmov (!%p185_p10), 683565275   ;;  %v752_v33 = vmov (!%p185_p10), 2475754826  }
  0x16   : > { %v753_v36 = vmov (!%p185_p10), 2131351028   ;;  %s754_s9 = smov (!%p185_p10), [#allocation2]  }
  0x17   : > { %v229_v10 = vcvt.s32.f32 (!%p185_p10), %v228_v9  ;;  %s652_s10 = sshll.u32 (!%p185_p10), %s754_s9, 4  ;;  %s653_s10 = int_to_ptr.vmem [resolvable:$false] %s652_s10 }
  0x18   : > { %s214_s12 = scalar_select %p213_p12, %s730_s19, 1 }
  0x19   : > { %s216_s13 = scalar_select %p215_p13, %s726_s18, 1  ;;  %v237_v12 = vmul.f32 %v532_v11, %v229_v10 }
  0x1a   : > { %s529_s14 = sshll.u32 %s214_s12, 1  ;;  %s210_s12 = sand.u32 1, %s718_s16  }
  0x1b   : > { %s218_s23 = sadd.s32 %s529_s14, %s216_s13  ;;  %v871_v14 = vadd.f32 %v533_v13, %v237_v12  ;;  %s528_s13 = sshll.u32 %s210_s12, 3 }
  0x1c   : > { %s530_s24 = sshll.u32 %s218_s23, 3  ;;  %s541_s14 = sshll.u32 %s730_s19, 1 }
  0x1d   : > { %s220_s5 = scalar_lea.vmem %s963_s0, %s530_s24  ;;  %v249_v15 = vand.u32 2139095040, %v871_v14  ;;  %v246_v26 = vand.u32 2147483647, %v871_v14  ;;  %vm248_vm12 = vcmp.lt.s32.totalorder %v871_v14, 0  ;;  %vm338_vm1 = vweird.f32 %v871_v14  ;;  %s441_s23 = sadd.s32 %s726_s18, %s541_s14 }
  0x1e   : > { %v221_v5 = vld [vmem:[%s220_s5] sm:$0xff]  ;;  %s542_s24 = sshll.u32 %s441_s23, 7  ;;  %s212_s27 = scalar_lea.vmem [#allocation2], %s528_s13 }
  0x1f   : > { %553 = vmatmul.mubr.msk.f32.vlgmr.msra.gmra.mrb[0].mxu0 %vm350_vm4, %v221_v5  ;;  %v250_v16 = vshrl.u32 %v249_v15, 23  ;;  %v253_v41 = vand.u32 8388607, %v246_v26  ;;  %vm247_vm13 = vcmp.le.f32.partialorder %v246_v26, 0.7853982  ;;  %s445_s30 = sshll.u32 %s212_s27, 4  ;;  %s910_s8 = scalar_lea.hbm %s967_s4, %s542_s24  ;;  %s912_s30 = int_to_ptr.vmem [resolvable:$true] %s445_s30 }
  0x20   : > { %s430_s19 = scalar_lea.sflag [#allocation3], %s210_s12  ;;  %s648_s18 = scalar_lea.vmem %s912_s30, 128 }
  0x21   : > { %v534_v17 = vadd.s32 4294967169, %v250_v16  ;;  %v254_v47 = vor.u32 8388608, %v253_v41  ;;  %p649_p0 = scmp.ne.s32.totalorder %s912_s30, %s648_s18  ;;  %s654_s11 = scalar_lea.vmem %s653_s10, 256 }
  0x22   : > { %p655_p4 = scmp.lt.s32.totalorder %s912_s30, %s653_s10  ;;  %p656_p5 = scmp.lt.s32.totalorder %s654_s11, %s648_s18 }
  0x23   : > { %v256_v18 = vadd.s32 1, %v534_v17  ;;  %v294_v53 = vshll.u32 %v254_v47, 8  ;;  %p650_p1 = pnand %p649_p0, %p831_p3 }
  0x24   : > { %p657_p6 = por %p656_p5, %p655_p4 }
  0x25   : > { %vm257_vm5 = vcmp.gt.s32.totalorder %v256_v18, 0  ;;  %p651_p2 = pneg %p650_p1 }
  0x26   : > { %v258_v19 = vsel %vm257_vm5, %v256_v18, 0 }
  0x27   : > { %v260_v20 = vand.u32 31, %v258_v19  ;;  %v259_v27 = vshrl.u32 %v258_v19, 5  ;;  %p658_p7 = pnand %p657_p6, %p651_p2 }
  0x29   : > { %v261_v21 = vsub.s32 32, %v260_v20  ;;  %v272_v23 = vshll.u32 %v748_v22, %v260_v20  ;;  %v275_v28 = vshll.u32 %v749_v24, %v260_v20  ;;  %v263_v32 = vshll.u32 %v751_v31, %v260_v20 }
  0x2a   : > { %v266_v34 = vshll.u32 %v752_v33, %v260_v20  ;;  %v269_v38 = vshll.u32 %v753_v36, %v260_v20  ;;  %vm281_vm6 = vcmp.lt.s32.totalorder %v259_v27, 4  ;;  %vm278_vm7 = vcmp.lt.s32.totalorder %v259_v27, 1 }
  0x2b   : > { %v273_v25 = vshrl.u32 %v749_v24, %v261_v21  ;;  %v276_v30 = vshrl.u32 %v750_v29, %v261_v21  ;;  %v264_v35 = vshrl.u32 %v752_v33, %v261_v21  ;;  %v267_v37 = vshrl.u32 %v753_v36, %v261_v21 }
  0x2c   : > { %v270_v39 = vshrl.u32 %v748_v22, %v261_v21  ;;  %vm280_vm8 = vcmp.lt.s32.totalorder %v259_v27, 3  ;;  %vm279_vm9 = vcmp.lt.s32.totalorder %v259_v27, 2  ;;  %v262_v58 = vshrl.u32 %v751_v31, %v261_v21 }
  0x2d   : > { %v274_v40 = vor.u32 %v273_v25, %v272_v23  ;;  %v277_v42 = vor.u32 %v276_v30, %v275_v28  ;;  %v265_v43 = vor.u32 %v264_v35, %v263_v32  ;;  %v268_v44 = vor.u32 %v267_v37, %v266_v34 }
  0x2e   : > { %v271_v45 = vor.u32 %v270_v39, %v269_v38 }
  0x2f   : > { %v287_v46 = vsel %vm281_vm6, %v274_v40, 920167782  ;;  %v291_v48 = vsel %vm281_vm6, %v277_v42, 1326507024  ;;  %v286_v49 = vsel %vm278_vm7, %v265_v43, %v268_v44  ;;  %v282_v62 = vsel %vm278_vm7, %v262_v58, %v265_v43 }
  0x30   : > { %v288_v50 = vsel %vm280_vm8, %v271_v45, %v287_v46  ;;  %v290_v51 = vsel %vm278_vm7, %v268_v44, %v271_v45  ;;  %v292_v52 = vsel %vm280_vm8, %v274_v40, %v291_v48  ;;  %v283_v61 = vsel %vm281_vm6, %v271_v45, 2102212464 }
  0x31   : > { %v289_v54 = vsel %vm279_vm9, %v286_v49, %v288_v50  ;;  %v293_v55 = vsel %vm279_vm9, %v290_v51, %v292_v52  ;;  %v284_v63 = vsel %vm280_vm8, %v268_v44, %v283_v61 }
  0x32   : > { %v885_v56 = vmul.u32.u64.low %v294_v53, %v289_v54  ;;  %v886_v57 = vmul.u32.u64.high %v294_v53, %v289_v54, %v885_v56  ;;  %v888_v59 = vmul.u32.u64.low %v294_v53, %v293_v55  ;;  %v889_v60 = vmul.u32.u64.high %v294_v53, %v293_v55, %v888_v59 }
  0x33   : > { %v285_v0 = vsel %vm279_vm9, %v282_v62, %v284_v63 }
  0x34   : > { %v304_v1 = vadd.s32 1, %v886_v57  ;;  %vm303_vm10 = vc.u32 %v889_v60, %v885_v56  ;;  %v301_v2 = vmul.u32 %v294_v53, %v285_v0  ;;  %v302_v16 = vadd.s32 %v885_v56, %v889_v60 }
  0x36   : > { %v305_v3 = vsel %vm303_vm10, %v304_v1, %v886_v57 }
  0x37   : > { %v306_v4 = vadd.s32 %v305_v3, %v301_v2 }
  0x39   : > { %v307_v5 = vadd.s32 536870912, %v306_v4 }
  0x3b   : > { %v308_v6 = vshrl.u32 %v307_v5, 30 }
  0x3d   : > { %v309_v7 = vshll.u32 %v308_v6, 30  ;;  %v332_v30 = vsub.s32 4, %v308_v6 }
  0x3f   : > { %v310_v8 = vsub.s32 %v306_v4, %v309_v7  ;;  %v333_v32 = vsel %vm248_vm12, %v332_v30, %v308_v6 }
  0x40   : > { %v335_v33 = vsel %vm247_vm13, 0, %v333_v32 }
  0x41   : > { %v312_v9 = vsub.s32 0, %v310_v8  ;;  %v339_v34 = vadd.s32 3, %v335_v33 }
  0x43   : > { %v535_v10 = vmin.u32 %v312_v9, %v310_v8  ;;  %v340_v37 = vand.u32 3, %v339_v34 }
  0x45   : > { %v314_v11 = vclz %v535_v10  ;;  %vm342_vm14 = vcmp.eq.s32.totalorder %v340_v37, 0  ;;  %vm345_vm15 = vcmp.eq.s32.totalorder %v340_v37, 2  ;;  %vm341_vm0 = vcmp.lt.s32.totalorder %v340_v37, 2 }
  0x47   : > { %v536_v12 = vadd.s32 4294967294, %v314_v11 }
  0x49   : > { %vm537_vm11 = vcmp.lt.s32.totalorder %v536_v12, 0 }
  0x4a   : > { %v317_v13 = vsel %vm537_vm11, 0, %v536_v12 }
  0x4b   : > { %v322_v15 = vsub.s32 4294967266, %v317_v13  ;;  %v318_v17 = vsub.s32 32, %v317_v13  ;;  %v319_v19 = vshll.u32 %v310_v8, %v317_v13 }
  0x4d   : > { %v323_v18 = vadd.s32 127, %v322_v15  ;;  %v320_v20 = vshrl.u32 %v302_v16, %v318_v17 }
  0x4f   : > { %v324_v21 = vshll.u32 %v323_v18, 23  ;;  %v321_v22 = vor.u32 %v320_v20, %v319_v19 }
  0x51   : > { %v325_v23 = vor.u32 4788187, %v324_v21  ;;  %v328_v25 = vcvt.s32.f32 %v321_v22 }
  0x53   : > { %v326_v24 = vand.u32 2147483647, %v325_v23 }
  0x55   : > { %v329_v27 = vmul.f32 %v328_v25, %v326_v24 }
  0x57   : > { %v330_v28 = vxor.u32 2147483648, %v329_v27 }
  0x59   : > { %v331_v29 = vsel %vm248_vm12, %v330_v28, %v329_v27 }
  0x5a   : > { %v334_v31 = vsel %vm247_vm13, %v871_v14, %v331_v29 }
  0x5b   : > { %644 = vcosq.f32 %v334_v31 }
  0x5c   : > { %646 = vsinq.f32 %v334_v31 }
  0x65   : > { %v645_v35 = vpop.eup %644 }
  0x66   : > { %v647_v36 = vpop.eup %646  ;;  %v346_v39 = vxor.u32 2147483648, %v645_v35 }
  0x67   : > { %v343_v38 = vxor.u32 2147483648, %v647_v36 }
  0x68   : > { %v347_v40 = vsel %vm345_vm15, %v346_v39, %v647_v36 }
  0x69   : > { %v344_v26 = vsel %vm342_vm14, %v645_v35, %v343_v38 }
  0x6a   : > { %v348_v41 = vsel %vm341_vm0, %v344_v26, %v347_v40 }
  0x6b   : > { %v349_v42 = vsel %vm338_vm1, nan, %v348_v41 }
  0xf2   : > { %v424_v43 = vpop.f32.mrb[0].mxu0 }
  0xf3   : > { %v425_v44 = vadd.f32 %v424_v43, %v349_v42  ;;  %v554_v45 = vpop.f32.mrb[1].mxu0 }
  0xf5   : > { %428 = vst [vmem:[%s212_s27] sm:$0xff] %v425_v44 }
  0xf6   : > { %661 = shalt.err (!%p658_p7)
}
  0xf7   : > { %s662_s12 = scalar_lea.hbm %s910_s8, 128  ;;  %s666_s23 = scalar_lea.hbm %s967_s4, 512 }
  0xf8   : > { %p663_p9 = scmp.ne.s32.totalorder %s910_s8, %s662_s12  ;;  %p667_p12 = scmp.lt.u32.totalorder %s910_s8, %s967_s4 }
  0xf9   : > { %p668_p13 = scmp.lt.u32.totalorder %s666_s23, %s662_s12  ;;  %p670_p1 = scmp.lt.u32.totalorder %s662_s12, %s910_s8 }
  0xfa   : > { %p664_p10 = pnand %p663_p9, %p831_p3 }
  0xfb   : > { %p669_p0 = por %p668_p13, %p667_p12 }
  0xfc   : > { %p665_p11 = pneg %p664_p10 }
  0xfd   : > { %p671_p2 = por %p670_p1, %p669_p0 }
  0xff   : > { %p672_p4 = pnand %p671_p2, %p665_p11 }
 0x101   : > { %675 = shalt.err (!%p672_p4)
}
 0x102   : > { %563 = dma.vmem_to_hbm [thread:$0]  (%p831_p3), %s912_s30, 128, %s910_s8, %s430_s19  }
 0x103 PF: > { %p569_p5 = scmp.ge.s32.totalorder %s742_s22, 2  ;;  %s457_s5 = sand.u32 1, %s714_s15  }
 0x104   : > { %s458_s6 = scalar_lea.sflag [#allocation3], %s457_s5 }
 0x105   : > { %p566_p6 = pnand %p569_p5, %p840_p8 }
 0x107   : > { %709 = dma.done.wait (!%p566_p6), %s458_s6, 128  }
 0x108   : > { %711 = vsyncadd (!%p566_p6), %s458_s6, 4294967168  ;;  %s17_s22 = sadd.s32 1, %s742_s22   ;;  %s970_s15 = smov %s718_s16 }
 0x109   : > { %p14_p7 = scmp.ge.s32.totalorder %s17_s22, 6   ;;  %s971_s16 = smov %s722_s17 }
 0x10a   : > { %s972_s17 = smov %s849_s7  ;;  %s973_s18 = smov %s734_s20 }
 0x10b   : > { %s974_s19 = smov %s738_s21  ;;  %s975_s20 = smov %s978_s25 }
 0x10c   : > { %s976_s21 = smov %s982_s26  ;;  %16 = sbr.rel (!%p14_p7) target bundleno = 5 (0x5), region = 71 }
 0x113   :  { %463 = vsyncpa [#allocation3], 1 }
 0x114   :  { %465 = vsyncpa [#allocation3 + $0x1], 1 }

</bundles_post_ra>
